<compile_context>
chip_gen: v7x
topology: tpu7x:2x2x1
jax: 0.10.0
libtpu: 0.0.40
codegen_flags: <defaults>
</compile_context>

<pallas_src>
import functools

import jax
import jax.numpy as jnp
from jax.experimental import pallas as pl
from jax.experimental.pallas import tpu as pltpu


def _round_up(x, m):
    return (x + m - 1) // m * m


def _pick_tile(size, base, cap):
    """Largest tile that is a multiple of `base`, <= cap, and divides the
    `base`-padded size.  Returns (tile, padded_size)."""
    padded = _round_up(size, base)
    tile = base
    t = base
    while t <= min(cap, padded):
        if padded % t == 0:
            tile = t
        t += base
    return tile, padded


def _vmem_budget_bytes():
    """VMEM byte budget for one hot-path generation (capacity minus headroom
    for Mosaic internal scratch / semaphores / alignment)."""
    cap = None
    try:
        cap = getattr(pltpu.get_tpu_info(), "vmem_capacity_bytes", None)
    except Exception:
        cap = None
    if not cap:
        cap = 64 * 1024 * 1024          # conservative fallback (v7x-sized)
    budget = int(min(cap - (16 << 20), cap * 0.75))
    return max(budget, 16 << 20)


# ----------------------------------------------------------------------------
# Pallas kernel 1: tiled matmul with f32 VMEM accumulator (hyper-net convs).
# ----------------------------------------------------------------------------
def _matmul_kernel(a_ref, b_ref, o_ref, acc_ref):
    @pl.when(pl.program_id(2) == 0)
    def _():
        acc_ref[...] = jnp.zeros_like(acc_ref)

    acc_ref[...] += jnp.dot(a_ref[...], b_ref[...],
                            preferred_element_type=jnp.float32)

    @pl.when(pl.program_id(2) == pl.num_programs(2) - 1)
    def _():
        o_ref[...] = acc_ref[...].astype(o_ref.dtype)


def pallas_matmul(a, b):
    """(M,K) @ (K,N): bf16 operands into the MXU, f32 accumulate/output.
    Pads M/N/K to (8,128)-aligned tiles, K-axis innermost grid."""
    M, K = a.shape
    _, N = b.shape
    tm, Mp = _pick_tile(M, 8, 256)
    tk, Kp = _pick_tile(K, 128, 512)
    tn, Np = _pick_tile(N, 128, 512)
    a = jnp.pad(a, ((0, Mp - M), (0, Kp - K))).astype(jnp.bfloat16)
    b = jnp.pad(b, ((0, Kp - K), (0, Np - N))).astype(jnp.bfloat16)
    out = pl.pallas_call(
        _matmul_kernel,
        out_shape=jax.ShapeDtypeStruct((Mp, Np), jnp.float32),
        grid_spec=pltpu.PrefetchScalarGridSpec(
            num_scalar_prefetch=0,
            grid=(Mp // tm, Np // tn, Kp // tk),
            in_specs=[
                pl.BlockSpec((tm, tk), lambda i, j, kk: (i, kk)),
                pl.BlockSpec((tk, tn), lambda i, j, kk: (kk, j)),
            ],
            out_specs=pl.BlockSpec((tm, tn), lambda i, j, kk: (i, j)),
            scratch_shapes=[pltpu.VMEM((tm, tn), jnp.float32)],
        ),
        compiler_params=pltpu.CompilerParams(
            dimension_semantics=("parallel", "parallel", "arbitrary")),
    )(a, b)
    return out[:M, :N]


# ----------------------------------------------------------------------------
# Pallas kernel 2: the TVConv hot path (fused unfold + weighted sum).
#   out[i, j, c] = sum_{kh,kw} weight[kh*k+kw, i, j, c] * x_pad[i+kh, j+kw, c]
# ----------------------------------------------------------------------------
def _tvconv_kernel(xp_ref, w_ref, o_ref, *, k, H, W):
    # xp_ref: (H+2p, Wp8, Ct) bf16  (halo'd, width right-padded to mult. of 8)
    # w_ref : (k*k, H, W, Ct) bf16  (tap-major, channels-last)
    # o_ref : (H, W, Ct) f32
    # C lives on the lane axis: kh is a free row offset of the load; the kw
    # shifts are sublane slices of the already-loaded row slab (XLU work, not
    # extra VMEM loads); lanes never shift and the store is lane-dense.
    acc = jnp.zeros(o_ref.shape, jnp.float32)
    for kh in range(k):
        slab = xp_ref[kh:kh + H, :, :].astype(jnp.float32)      # (H, Wp8, Ct)
        for kw in range(k):
            tap = kh * k + kw
            acc = acc + slab[:, kw:kw + W, :] * w_ref[tap].astype(jnp.float32)
    o_ref[...] = acc


def _pick_channel_tile(Cp, H, W, k, budget):
    """Largest channel tile (multiple of 128, divides Cp) whose per-generation
    VMEM working set fits `budget`:
      x (bf16, double-buffered) + weight (bf16, single-buffered) + out (f32,
      double-buffered), with the sublane dim rounded up to 8."""
    p = (k - 1) // 2
    hp = H + 2 * p
    wp = _round_up(W + 2 * p, 8)
    ws = _round_up(W, 8)

    def tile_bytes(ct):
        x_b = 2 * hp * wp * ct * 2          # bf16 x, 2 buffers
        w_b = 1 * k * k * H * ws * ct * 2   # bf16 weight, 1 buffer (Buffered(1))
        o_b = 2 * H * ws * ct * 4           # f32 out, 2 buffers
        return x_b + w_b + o_b

    # Keep >= 2 channel tiles when C allows it: the channel axis is the
    # megacore "parallel" axis, so both v7x cores get work WITHOUT duplicating
    # the dominant weight DMA (which splitting over batch would do).
    max_ct = Cp if Cp < 256 else Cp // 2
    best = 128
    ct = 128
    while ct <= max_ct:
        if Cp % ct == 0 and tile_bytes(ct) <= budget:
            best = ct
        ct += 128
    # TODO(synk): if tile_bytes(128) > budget (very large H*W, e.g. 112x112 on
    # v7x), add an H-tiled grid axis with halo'd row slabs instead of relying
    # on the raised vmem_limit_bytes alone.
    return best


def _weight_block_spec(block_shape, index_map):
    """Single-buffered BlockSpec for the generated weight: its block index is
    constant across the inner batch axis, so it is DMA'd once per channel tile
    anyway and a second buffer would only double the largest VMEM term."""
    try:
        return pl.BlockSpec(block_shape, index_map,
                            pipeline_mode=pl.Buffered(1))
    except Exception:       # older jax without pipeline_mode: fall back to 2x
        return pl.BlockSpec(block_shape, index_map)


def tvconv_channels_last(x_cl, weight_tap_cl, k):
    """Hot path, channels-last (no layout round trips).

    x_cl:          (B, H, W, C)  float  (carried as bf16 inside)
    weight_tap_cl: (k*k, H, W, Cp) bf16 with Cp = round_up(C, 128)
                   (as produced by generate_tvconv_weight)
    returns        (B, H, W, C)  float32
    """
    assert k % 2 == 1, "TVConv halo math assumes an odd kernel size (torch default)"
    B, H, W, C = x_cl.shape
    kk, wh, ww, Cp = weight_tap_cl.shape
    assert kk == k * k and wh == H and ww == W
    assert Cp % 128 == 0 and Cp >= C, "weight channels must be lane-padded"
    p = (k - 1) // 2
    Hp = H + 2 * p
    Wp8 = _round_up(W + 2 * p, 8)            # sublane-dense halo'd width

    budget = _vmem_budget_bytes()
    Ct = _pick_channel_tile(Cp, H, W, k, budget)

    # Halo pad + lane pad + bf16 cast fused into one small-x-stream copy.
    # TODO(synk): handle the halo with in-kernel edge masking to drop this
    # padded copy entirely for fully channels-last callers.
    xp = jnp.pad(x_cl.astype(jnp.bfloat16),
                 ((0, 0), (p, p), (p, Wp8 - W - p), (0, Cp - C)))

    kern = functools.partial(_tvconv_kernel, k=k, H=H, W=W)
    out_cl = pl.pallas_call(
        kern,
        out_shape=jax.ShapeDtypeStruct((B, H, W, Cp), jnp.float32),
        grid_spec=pltpu.PrefetchScalarGridSpec(
            num_scalar_prefetch=0,
            # b innermost: the weight tile is DMA'd only once per channel tile.
            grid=(Cp // Ct, B),
            in_specs=[
                pl.BlockSpec((pl.Squeezed(), Hp, Wp8, Ct),
                             lambda c, b: (b, 0, 0, c)),
                _weight_block_spec((k * k, H, W, Ct),
                                   lambda c, b: (0, 0, 0, c)),
            ],
            out_specs=pl.BlockSpec((pl.Squeezed(), H, W, Ct),
                                   lambda c, b: (b, 0, 0, c)),
        ),
        compiler_params=pltpu.CompilerParams(
            # Channel axis is the megacore split axis (weight traffic stays 1x
            # per core); batch is a plain sequential axis.
            dimension_semantics=("parallel", "arbitrary"),
            vmem_limit_bytes=budget),
    )(xp, weight_tap_cl)
    return out_cl[..., :C]


def tvconv_spatial_variant(x_nchw, weight_tap_cl, k):
    """torch-layout wrapper: x (B, C, H, W) -> (B, C, H, W).
    Production code that is already channels-last should call
    tvconv_channels_last directly and skip both transposes (they are extra
    HBM round trips on the hot path)."""
    out_cl = tvconv_channels_last(jnp.transpose(x_nchw, (0, 2, 3, 1)),
                                  weight_tap_cl, k)
    return jnp.transpose(out_cl, (0, 3, 1, 2))


tvconv_apply = jax.jit(tvconv_spatial_variant, static_argnums=(2,))
tvconv_apply_cl = jax.jit(tvconv_channels_last, static_argnums=(2,))


# ----------------------------------------------------------------------------
# Weight-generator hyper-network (tiny; parameter-only — runs once).
# Conv3x3 (no bias) -> im2col + tiled Pallas MXU matmul; LayerNorm/ReLU in JAX.
# ----------------------------------------------------------------------------
def conv3x3_pallas(y_cl, w):
    # y_cl: (H, W, Cin) channels-last; w: (Cout, Cin, 3, 3) torch layout.
    H, W, Cin = y_cl.shape
    Cout = w.shape[0]
    yp = jnp.pad(y_cl, ((1, 1), (1, 1), (0, 0)))
    cols = [yp[kh:kh + H, kw:kw + W, :] for kh in range(3) for kw in range(3)]
    patches = jnp.concatenate(cols, axis=-1).reshape(H * W, 9 * Cin)
    wmat = jnp.transpose(w, (2, 3, 1, 0)).reshape(9 * Cin, Cout)
    out = pallas_matmul(patches, wmat)            # (H*W, Cout) f32
    return out.reshape(H, W, Cout)


def layer_norm_full(y_cl, gamma_cl, beta_cl, eps=1e-5):
    # nn.LayerNorm([C, h, w]) on a batch-1 tensor == normalize over everything.
    # NOTE: gamma/beta are stored channels-last (h, w, C); importing torch
    # LayerNorm([C, h, w]) parameters requires a (1, 2, 0) transpose.
    mean = jnp.mean(y_cl)
    var = jnp.mean((y_cl - mean) ** 2)
    return (y_cl - mean) * jax.lax.rsqrt(var + eps) * gamma_cl + beta_cl


def conv_block(y_cl, params):
    # _ConvBlock: Conv2d(3x3, no bias) -> LayerNorm([C,h,w]) -> ReLU
    y = conv3x3_pallas(y_cl, params["w"])
    y = layer_norm_full(y, params["gamma"], params["beta"])
    return jnp.maximum(y, 0.0)


def make_weight_layers_params(key, in_chans, inter_chans, out_chans,
                              num_inter_layers, h, w):
    params = []
    dims = [(in_chans, inter_chans)] + [(inter_chans, inter_chans)] * num_inter_layers
    for (ci, co) in dims:
        key, k1 = jax.random.split(key)
        params.append({
            "w": 0.1 * jax.random.normal(k1, (co, ci, 3, 3), jnp.float32),
            "gamma": jnp.ones((h, w, co), jnp.float32),   # channels-last affine
            "beta": jnp.zeros((h, w, co), jnp.float32),
        })
    key, k1 = jax.random.split(key)
    final_w = 0.1 * jax.random.normal(k1, (out_chans, inter_chans, 3, 3),
                                      jnp.float32)
    return params, final_w


def generate_tvconv_weight(posi_map_cl, block_params, final_w, channels, k):
    """Hyper-net forward.  Returns:
      - hot-path weight (k*k, h, w, Cp) bf16, channels lane-padded to Cp=128n
      - reference weight (k*k, h, w, C) f32 (for accuracy checks / export)
    Depends only on parameters, so callers cache both across forward passes."""
    y = posi_map_cl
    for p in block_params:
        y = conv_block(y, p)
    raw = conv3x3_pallas(y, final_w)              # (h, w, k*k*channels) f32
    h, w, _ = raw.shape
    # torch: weight.view(1, C, k*k, h, w)  =>  raw channel index = c*k*k + tap
    w_tap = jnp.transpose(raw.reshape(h, w, channels, k * k), (3, 0, 1, 2))
    Cp = _round_up(channels, 128)
    w_hot = jnp.pad(w_tap, ((0, 0), (0, 0), (0, 0), (0, Cp - channels)))
    return w_hot.astype(jnp.bfloat16), w_tap


# Pure-JAX reference of the hot path (unfold + weighted sum), for validation.
def ref_tvconv(x, weight_c_tap, k):
    # x: (B, C, H, W) f32; weight_c_tap: (C, k*k, H, W) f32
    B, C, H, W = x.shape
    p = (k - 1) // 2
    xp = jnp.pad(x, ((0, 0), (0, 0), (p, p), (p, p)))
    out = jnp.zeros_like(x)
    for kh in range(k):
        for kw in range(k):
            out = out + (weight_c_tap[None, :, kh * k + kw]
                         * xp[:, :, kh:kh + H, kw:kw + W])
    return out


if __name__ == "__main__":
    # Small, module-consistent shapes.  C=96 deliberately exercises the
    # pad-channels-to-128 lane-dense path (the review's top item).
    B, C = 2, 96
    H = W = 16                     # spatial size of x must equal (h, w)
    k = 3
    posi_chans, inter_chans, inter_layers = 4, 32, 2
    # TODO(synk): TVConv_Bias=True branch (bias_layers) not exercised (module
    # default is False); it would reuse generate_tvconv_weight with
    # out_chans=C plus a broadcast add on the output.

    key = jax.random.PRNGKey(0)
    kx, kp = jax.random.split(key)
    x = jax.random.normal(kx, (B, C, H, W), jnp.float32)
    posi_map_cl = jnp.ones((H, W, posi_chans), jnp.float32)   # nn.init.ones_

    block_params, final_w = make_weight_layers_params(
        kp, posi_chans, inter_chans, k * k * C, inter_layers, H, W)

    # Hyper-net runs once (parameter-only); hot path runs per input batch.
    w_hot, w_f32 = generate_tvconv_weight(posi_map_cl, block_params, final_w, C, k)
    w_hot = jax.block_until_ready(w_hot)
    w_f32 = jax.block_until_ready(w_f32)

    out = jax.block_until_ready(tvconv_apply(x, w_hot, k))
    assert out.shape == (B, C, H, W)

    # 1) Kernel-exactness check: same bf16 x / bf16 weights in a JAX reference.
    x_bf = x.astype(jnp.bfloat16).astype(jnp.float32)
    w_bf = jnp.transpose(w_hot[..., :C].astype(jnp.float32), (3, 0, 1, 2))
    ref_bf = ref_tvconv(x_bf, w_bf, k)
    assert jnp.allclose(out, ref_bf, rtol=1e-3, atol=1e-3), "mismatch vs reference"

    # 2) Accuracy vs full-f32 TVConv math (measures bf16 x/weight quantization).
    w_full = jnp.transpose(w_f32, (3, 0, 1, 2))
    ref_f32 = ref_tvconv(x, w_full, k)
    rel = jnp.max(jnp.abs(out - ref_f32)) / (jnp.max(jnp.abs(ref_f32)) + 1e-12)
    assert rel < 0.05, f"bf16 quantization error too large: {rel}"

    print("KERNEL_OK")
</pallas_src>

<mosaic_0001>
module attributes {stable_mosaic.version = 11 : i64} {
  func.func @_matmul_kernel(%arg0: i32, %arg1: i32, %arg2: i32, %arg3: memref<256x128xbf16, #tpu.memory_space<vmem>>, %arg4: memref<128x128xbf16, #tpu.memory_space<vmem>>, %arg5: memref<256x128xf32, #tpu.memory_space<vmem>>, %arg6: memref<256x128xf32, #tpu.memory_space<vmem>>) attributes {dimension_semantics = [#tpu.dimension_semantics<parallel>, #tpu.dimension_semantics<parallel>, #tpu.dimension_semantics<arbitrary>], iteration_bounds = array<i64: 1, 1, 1>, scalar_prefetch = 0 : i64, scratch_operands = 1 : i64, tpu.core_type = #tpu.core_type<tc>, window_params = [{transform_indices = @transform_0, window_bounds = array<i64: 256, 128>}, {transform_indices = @transform_1, window_bounds = array<i64: 128, 128>}, {transform_indices = @transform_2, window_bounds = array<i64: 256, 128>}]} {
    %c0_i32 = arith.constant 0 : i32
    %0 = arith.cmpi eq, %arg2, %c0_i32 : i32
    %1 = arith.extui %0 : i1 to i32
    %c0_i32_0 = arith.constant 0 : i32
    %2 = arith.cmpi ne, %1, %c0_i32_0 : i32
    scf.if %2 {
      %cst_10 = arith.constant 0.000000e+00 : f32
      %12 = vector.broadcast %cst_10 : f32 to vector<256x128xf32>
      %c0_11 = arith.constant 0 : index
      %c0_12 = arith.constant 0 : index
      %13 = vector.load %arg6[%c0_11, %c0_12] : memref<256x128xf32, #tpu.memory_space<vmem>>, vector<256x128xf32>
      tpu.vector_store %arg6[%c0_11, %c0_12], %12 {strides = array<i32>} : memref<256x128xf32, #tpu.memory_space<vmem>>, vector<256x128xf32>,
    } else {
    }
    %c0 = arith.constant 0 : index
    %c0_1 = arith.constant 0 : index
    %3 = vector.load %arg6[%c0, %c0_1] : memref<256x128xf32, #tpu.memory_space<vmem>>, vector<256x128xf32>
    %c0_2 = arith.constant 0 : index
    %c0_3 = arith.constant 0 : index
    %4 = vector.load %arg3[%c0_2, %c0_3] : memref<256x128xbf16, #tpu.memory_space<vmem>>, vector<256x128xbf16>
    %c0_4 = arith.constant 0 : index
    %c0_5 = arith.constant 0 : index
    %5 = vector.load %arg4[%c0_4, %c0_5] : memref<128x128xbf16, #tpu.memory_space<vmem>>, vector<128x128xbf16>
    %cst = arith.constant dense<0.000000e+00> : vector<256x128xf32>
    %6 = tpu.matmul %4, %5, %cst {dimension_numbers = #tpu.dot_dimension_numbers<[1], [0], [0], [1], [0, 0, 1, 1], [], []>} : vector<256x128xbf16>, vector<128x128xbf16>, vector<256x128xf32> -> vector<256x128xf32>
    %7 = arith.addf %3, %6 : vector<256x128xf32>
    %c0_6 = arith.constant 0 : index
    %c0_7 = arith.constant 0 : index
    %8 = vector.load %arg6[%c0_6, %c0_7] : memref<256x128xf32, #tpu.memory_space<vmem>>, vector<256x128xf32>
    tpu.vector_store %arg6[%c0_6, %c0_7], %7 {strides = array<i32>} : memref<256x128xf32, #tpu.memory_space<vmem>>, vector<256x128xf32>,
    %c0_i32_8 = arith.constant 0 : i32
    %9 = arith.cmpi eq, %arg2, %c0_i32_8 : i32
    %10 = arith.extui %9 : i1 to i32
    %c0_i32_9 = arith.constant 0 : i32
    %11 = arith.cmpi ne, %10, %c0_i32_9 : i32
    scf.if %11 {
      %c0_10 = arith.constant 0 : index
      %c0_11 = arith.constant 0 : index
      %12 = vector.load %arg6[%c0_10, %c0_11] : memref<256x128xf32, #tpu.memory_space<vmem>>, vector<256x128xf32>
      %c0_12 = arith.constant 0 : index
      %c0_13 = arith.constant 0 : index
      %13 = vector.load %arg5[%c0_12, %c0_13] : memref<256x128xf32, #tpu.memory_space<vmem>>, vector<256x128xf32>
      tpu.vector_store %arg5[%c0_12, %c0_13], %12 {strides = array<i32>} : memref<256x128xf32, #tpu.memory_space<vmem>>, vector<256x128xf32>,
    } else {
    }
    return
  }
  func.func @transform_0(%arg0: i32, %arg1: i32, %arg2: i32) -> (i32, i32) {
    %c0_i32 = arith.constant 0 : i32
    return %arg0, %arg2 : i32, i32
  }
  func.func @transform_1(%arg0: i32, %arg1: i32, %arg2: i32) -> (i32, i32) {
    %c0_i32 = arith.constant 0 : i32
    return %arg2, %arg1 : i32, i32
  }
  func.func @transform_2(%arg0: i32, %arg1: i32, %arg2: i32) -> (i32, i32) {
    %c0_i32 = arith.constant 0 : i32
    return %arg0, %arg1 : i32, i32
  }
}

</mosaic_0001>

<bundles_post_ra>
// kernel: tpu_custom_call.1
= control target key start
LH: loop header
LB: loop body
LE: loop exit
PB: predicated region body
PF: predicated region fallthrough
CT: control target
= control target key end

     0   :  { %7 = vsyncpa [#allocation4], 0  ;;  %s884_s0 = inlined_call_operand.hbm [shape: bf16[256,128], index: 0, kind: input, shape index: {}]   ;;  %s885_s1 = inlined_call_operand.hbm [shape: bf16[128,128], index: 1, kind: input, shape index: {}]   ;;  %s886_s2 = inlined_call_operand.hbm [shape: f32[256,128], index: 2, kind: output, shape index: {}]  }
   0x1   :  { %8 = vsyncpa [#allocation7], 0 }
   0x2   :  { %9 = vsyncpa [#allocation5], 0  ;;  %s826_s9 = smov [#allocation3]   ;;  %s754_s13 = scalar_lea.hbm %s884_s0, 2048 }
   0x3   :  { %s15_s10 = sshll.u32 %s826_s9, 4  ;;  %p755_p0 = scmp.ne.s32.totalorder %s884_s0, %s754_s13  ;;  %s16_s10 = int_to_ptr.vmem [resolvable:$true] %s15_s10 }
   0x4   :  { %p758_p1 = scmp.lt.u32.totalorder %s754_s13, %s884_s0 }
   0x6   :  { %p760_p2 = pnand %p758_p1, %p755_p0 }
   0x8   :  { %763 = shalt.err (!%p760_p2)
}
   0x9   :  { %s764_s18 = scalar_lea.vmem %s16_s10, 2048  ;;  %p769_p4 = scmp.lt.s32.totalorder %s16_s10, %s16_s10 }
   0xa   :  { %p765_p3 = scmp.ne.s32.totalorder %s16_s10, %s764_s18  ;;  %p770_p5 = scmp.lt.s32.totalorder %s764_s18, %s764_s18 }
   0xc   :  { %p771_p6 = por %p770_p5, %p769_p4 }
   0xe   :  { %p772_p7 = pnand %p771_p6, %p765_p3 }
  0x10   :  { %775 = shalt.err (!%p772_p7)
}
  0x11   :  { %s827_s19 = smov 64   ;;  %s828_s20 = smov 4  }
  0x12   :  { %21 = dma.hbm_to_vmem [thread:$0]  %s884_s0, 2048, %s16_s10, [#allocation4], %s827_s19, %s827_s19, %s828_s20  }
  0x13   :  { %s829_s23 = smov [#allocation6]   ;;  %s776_s27 = scalar_lea.hbm %s885_s1, 1024 }
  0x14   :  { %s27_s24 = sshll.u32 %s829_s23, 4  ;;  %p777_p8 = scmp.ne.s32.totalorder %s885_s1, %s776_s27  ;;  %s28_s24 = int_to_ptr.vmem [resolvable:$true] %s27_s24 }
  0x15   :  { %p780_p9 = scmp.lt.u32.totalorder %s776_s27, %s885_s1 }
  0x17   :  { %p782_p10 = pnand %p780_p9, %p777_p8 }
  0x19   :  { %785 = shalt.err (!%p782_p10)
}
  0x1a   :  { %s786_s4 = scalar_lea.vmem %s28_s24, 1024  ;;  %p791_p12 = scmp.lt.s32.totalorder %s28_s24, %s28_s24 }
  0x1b   :  { %p787_p11 = scmp.ne.s32.totalorder %s28_s24, %s786_s4  ;;  %p792_p13 = scmp.lt.s32.totalorder %s786_s4, %s786_s4 }
  0x1d   :  { %p793_p0 = por %p792_p13, %p791_p12 }
  0x1f   :  { %p794_p1 = pnand %p793_p0, %p787_p11 }
  0x21   :  { %797 = shalt.err (!%p794_p1)
}
  0x22   :  { %33 = dma.hbm_to_vmem [thread:$0]  %s885_s1, 1024, %s28_s24, [#allocation7], %s827_s19, %s827_s19, %s828_s20  }
  0x23   :  { %820 = dma.done.wait [#allocation4], 2048  }
  0x24   :  { %821 = vsyncadd [#allocation4], 4294965248 }
  0x25   :  { %822 = dma.done.wait [#allocation7], 1024  }
  0x26   :  { %823 = vsyncadd [#allocation7], 4294966272  ;;  %v730_v0 = vld [vmem:[#allocation6] sm:$0xff]   ;;  %v731_v1 = vld [vmem:[#allocation6 + $0x8] sm:$0xff]   ;;  %s830_s1 = smov [#allocation8]  }
  0x27   :  { %659 = vmatprep.subr.bf16.mxu0 %v730_v0  ;;  %707 = vmatprep.subr.bf16.mxu1 %v730_v0  ;;  %v732_v2 = vld [vmem:[#allocation6 + $0x10] sm:$0xff]   ;;  %v733_v3 = vld [vmem:[#allocation6 + $0x18] sm:$0xff]   ;;  %v738_v4 = vld [vmem:[#allocation3] sm:$0xff]   ;;  %s598_s6 = sshll.u32 %s830_s1, 4  ;;  %s599_s6 = int_to_ptr.vmem [resolvable:$true] %s598_s6 }
  0x28   :  { %660 = vmatpush3.bf16.msra.mxu0 %v730_v0  ;;  %715 = vmatpush3.bf16.msra.mxu1 %v730_v0  ;;  %v739_v5 = vld [vmem:[#allocation3 + $0x40] sm:$0xff]   ;;  %v735_v7 = vld [vmem:[#allocation6 + $0x28] sm:$0xff]   ;;  %v736_v8 = vld [vmem:[#allocation6 + $0x30] sm:$0xff]   ;;  %s798_s7 = scalar_lea.vmem %s599_s6, 4096  ;;  %p803_p3 = scmp.lt.s32.totalorder %s599_s6, %s599_s6 }
  0x29   :  { %661 = vmatprep.subr.bf16.mxu0 %v731_v1  ;;  %708 = vmatprep.subr.bf16.mxu1 %v731_v1  ;;  %v734_v6 = vld [vmem:[#allocation6 + $0x20] sm:$0xff]   ;;  %v737_v9 = vld [vmem:[#allocation6 + $0x38] sm:$0xff]   ;;  %v740_v10 = vld [vmem:[#allocation3 + $0x8] sm:$0xff]   ;;  %p799_p2 = scmp.ne.s32.totalorder %s599_s6, %s798_s7  ;;  %p804_p4 = scmp.lt.s32.totalorder %s798_s7, %s798_s7 }
  0x2a   :  { %675 = vmatprep.mubr.bf16.mxu0 %v738_v4  ;;  %691 = vmatprep.mubr.bf16.mxu1 %v739_v5  ;;  %v741_v11 = vld [vmem:[#allocation3 + $0x48] sm:$0xff]   ;;  %v742_v12 = vld [vmem:[#allocation3 + $0x10] sm:$0xff]   ;;  %v744_v14 = vld [vmem:[#allocation3 + $0x18] sm:$0xff]  }
  0x2b   :  { %v743_v13 = vld [vmem:[#allocation3 + $0x50] sm:$0xff]   ;;  %v745_v15 = vld [vmem:[#allocation3 + $0x58] sm:$0xff]   ;;  %v746_v16 = vld [vmem:[#allocation3 + $0x20] sm:$0xff]   ;;  %p805_p5 = por %p804_p4, %p803_p3 }
  0x2c   :  { %662 = vmatpush3.bf16.msra.mxu0 %v731_v1  ;;  %716 = vmatpush3.bf16.msra.mxu1 %v731_v1  ;;  %v747_v17 = vld [vmem:[#allocation3 + $0x60] sm:$0xff]   ;;  %v748_v18 = vld [vmem:[#allocation3 + $0x28] sm:$0xff]   ;;  %v750_v20 = vld [vmem:[#allocation3 + $0x30] sm:$0xff]  }
  0x2d   :  { %663 = vmatprep.subr.bf16.mxu0 %v732_v2  ;;  %709 = vmatprep.subr.bf16.mxu1 %v732_v2  ;;  %v749_v19 = vld [vmem:[#allocation3 + $0x68] sm:$0xff]   ;;  %v751_v21 = vld [vmem:[#allocation3 + $0x70] sm:$0xff]   ;;  %v752_v22 = vld [vmem:[#allocation3 + $0x38] sm:$0xff]   ;;  %p806_p6 = pnand %p805_p5, %p799_p2 }
  0x2e   :  { %v753_v23 = vld [vmem:[#allocation3 + $0x78] sm:$0xff]  }
  0x30   :  { %664 = vmatpush3.bf16.msra.mxu0 %v732_v2  ;;  %717 = vmatpush3.bf16.msra.mxu1 %v732_v2 }
  0x31   :  { %665 = vmatprep.subr.bf16.mxu0 %v733_v3  ;;  %710 = vmatprep.subr.bf16.mxu1 %v733_v3 }
  0x34   :  { %666 = vmatpush3.bf16.msra.mxu0 %v733_v3  ;;  %718 = vmatpush3.bf16.msra.mxu1 %v733_v3 }
  0x35   :  { %667 = vmatprep.subr.bf16.mxu0 %v734_v6  ;;  %711 = vmatprep.subr.bf16.mxu1 %v734_v6 }
  0x38   :  { %668 = vmatpush3.bf16.msra.mxu0 %v734_v6  ;;  %719 = vmatpush3.bf16.msra.mxu1 %v734_v6 }
  0x39   :  { %669 = vmatprep.subr.bf16.mxu0 %v735_v7  ;;  %712 = vmatprep.subr.bf16.mxu1 %v735_v7 }
  0x3c   :  { %670 = vmatpush3.bf16.msra.mxu0 %v735_v7  ;;  %720 = vmatpush3.bf16.msra.mxu1 %v735_v7 }
  0x3d   :  { %671 = vmatprep.subr.bf16.mxu0 %v736_v8  ;;  %713 = vmatprep.subr.bf16.mxu1 %v736_v8 }
  0x40   :  { %672 = vmatpush3.bf16.msra.mxu0 %v736_v8  ;;  %721 = vmatpush3.bf16.msra.mxu1 %v736_v8 }
  0x41   :  { %673 = vmatprep.subr.bf16.mxu0 %v737_v9  ;;  %714 = vmatprep.subr.bf16.mxu1 %v737_v9 }
  0x44   :  { %674 = vmatpush3.bf16.msra.mxu0 %v737_v9  ;;  %722 = vmatpush3.bf16.msra.mxu1 %v737_v9 }
  0x47   :  { %676 = vmatmul.mubr.bf16.vlgmr.msra.gmra.mrb[0].mxu0 %v740_v10  ;;  %692 = vmatmul.mubr.bf16.vlgmr.msra.gmra.mrb[0].mxu1 %v741_v11 }
  0x48   :  { %679 = vmatprep.mubr.bf16.mxu0 %v742_v12  ;;  %695 = vmatprep.mubr.bf16.mxu1 %v743_v13 }
  0x4f   :  { %680 = vmatmul.mubr.bf16.gmra.mrb[4].mxu0 %v744_v14  ;;  %696 = vmatmul.mubr.bf16.gmra.mrb[4].mxu1 %v745_v15 }
  0x50   :  { %683 = vmatprep.mubr.bf16.mxu0 %v746_v16  ;;  %699 = vmatprep.mubr.bf16.mxu1 %v747_v17 }
  0x57   :  { %684 = vmatmul.mubr.bf16.gmra.mrb[8].mxu0 %v748_v18  ;;  %700 = vmatmul.mubr.bf16.gmra.mrb[8].mxu1 %v749_v19 }
  0x58   :  { %687 = vmatprep.mubr.bf16.mxu0 %v750_v20  ;;  %703 = vmatprep.mubr.bf16.mxu1 %v751_v21 }
  0x5f   :  { %688 = vmatmul.mubr.bf16.gmra.mrb[12].mxu0 %v752_v22  ;;  %704 = vmatmul.mubr.bf16.gmra.mrb[12].mxu1 %v753_v23 }
 0x11a   :  { %v677_v24 = vpop.f32.mrb[0].mxu0  ;;  %v693_v25 = vpop.f32.mrb[0].mxu1 }
 0x11b   :  { %563 = vst [vmem:[#allocation8 + $0x10] sm:$0xff] %v677_v24  ;;  %579 = vst [vmem:[#allocation8 + $0x90] sm:$0xff] %v693_v25  ;;  %v335_v26 = vpop.f32.mrb[1].mxu0  ;;  %v399_v27 = vpop.f32.mrb[1].mxu1 }
 0x11c   :  { %561 = vst [vmem:[#allocation8] sm:$0xff] %v335_v26  ;;  %577 = vst [vmem:[#allocation8 + $0x80] sm:$0xff] %v399_v27  ;;  %v678_v28 = vpop.f32.mrb[2].mxu0  ;;  %v694_v29 = vpop.f32.mrb[2].mxu1 }
 0x11d   :  { %564 = vst [vmem:[#allocation8 + $0x18] sm:$0xff] %v678_v28  ;;  %580 = vst [vmem:[#allocation8 + $0x98] sm:$0xff] %v694_v29  ;;  %v338_v30 = vpop.f32.mrb[3].mxu0  ;;  %v402_v31 = vpop.f32.mrb[3].mxu1 }
 0x11e   :  { %562 = vst [vmem:[#allocation8 + $0x8] sm:$0xff] %v338_v30  ;;  %578 = vst [vmem:[#allocation8 + $0x88] sm:$0xff] %v402_v31 }
 0x122   :  { %v681_v32 = vpop.f32.mrb[4].mxu0  ;;  %v697_v33 = vpop.f32.mrb[4].mxu1 }
 0x123   :  { %567 = vst [vmem:[#allocation8 + $0x30] sm:$0xff] %v681_v32  ;;  %583 = vst [vmem:[#allocation8 + $0xb0] sm:$0xff] %v697_v33  ;;  %v351_v34 = vpop.f32.mrb[5].mxu0  ;;  %v415_v35 = vpop.f32.mrb[5].mxu1 }
 0x124   :  { %565 = vst [vmem:[#allocation8 + $0x20] sm:$0xff] %v351_v34  ;;  %581 = vst [vmem:[#allocation8 + $0xa0] sm:$0xff] %v415_v35  ;;  %v682_v36 = vpop.f32.mrb[6].mxu0  ;;  %v698_v37 = vpop.f32.mrb[6].mxu1 }
 0x125   :  { %568 = vst [vmem:[#allocation8 + $0x38] sm:$0xff] %v682_v36  ;;  %584 = vst [vmem:[#allocation8 + $0xb8] sm:$0xff] %v698_v37  ;;  %v354_v38 = vpop.f32.mrb[7].mxu0  ;;  %v418_v39 = vpop.f32.mrb[7].mxu1 }
 0x126   :  { %566 = vst [vmem:[#allocation8 + $0x28] sm:$0xff] %v354_v38  ;;  %582 = vst [vmem:[#allocation8 + $0xa8] sm:$0xff] %v418_v39 }
 0x12a   :  { %v685_v40 = vpop.f32.mrb[8].mxu0  ;;  %v701_v41 = vpop.f32.mrb[8].mxu1 }
 0x12b   :  { %571 = vst [vmem:[#allocation8 + $0x50] sm:$0xff] %v685_v40  ;;  %587 = vst [vmem:[#allocation8 + $0xd0] sm:$0xff] %v701_v41  ;;  %v367_v42 = vpop.f32.mrb[9].mxu0  ;;  %v431_v43 = vpop.f32.mrb[9].mxu1 }
 0x12c   :  { %569 = vst [vmem:[#allocation8 + $0x40] sm:$0xff] %v367_v42  ;;  %585 = vst [vmem:[#allocation8 + $0xc0] sm:$0xff] %v431_v43  ;;  %v686_v44 = vpop.f32.mrb[10].mxu0  ;;  %v702_v45 = vpop.f32.mrb[10].mxu1 }
 0x12d   :  { %572 = vst [vmem:[#allocation8 + $0x58] sm:$0xff] %v686_v44  ;;  %588 = vst [vmem:[#allocation8 + $0xd8] sm:$0xff] %v702_v45  ;;  %v370_v46 = vpop.f32.mrb[11].mxu0  ;;  %v434_v47 = vpop.f32.mrb[11].mxu1 }
 0x12e   :  { %570 = vst [vmem:[#allocation8 + $0x48] sm:$0xff] %v370_v46  ;;  %586 = vst [vmem:[#allocation8 + $0xc8] sm:$0xff] %v434_v47 }
 0x132   :  { %v689_v48 = vpop.f32.mrb[12].mxu0  ;;  %v705_v49 = vpop.f32.mrb[12].mxu1 }
 0x133   :  { %575 = vst [vmem:[#allocation8 + $0x70] sm:$0xff] %v689_v48  ;;  %591 = vst [vmem:[#allocation8 + $0xf0] sm:$0xff] %v705_v49  ;;  %v383_v50 = vpop.f32.mrb[13].mxu0  ;;  %v447_v51 = vpop.f32.mrb[13].mxu1 }
 0x134   :  { %573 = vst [vmem:[#allocation8 + $0x60] sm:$0xff] %v383_v50  ;;  %589 = vst [vmem:[#allocation8 + $0xe0] sm:$0xff] %v447_v51  ;;  %v690_v52 = vpop.f32.mrb[14].mxu0  ;;  %v706_v53 = vpop.f32.mrb[14].mxu1 }
 0x135   :  { %576 = vst [vmem:[#allocation8 + $0x78] sm:$0xff] %v690_v52  ;;  %592 = vst [vmem:[#allocation8 + $0xf8] sm:$0xff] %v706_v53  ;;  %v386_v54 = vpop.f32.mrb[15].mxu0  ;;  %v450_v55 = vpop.f32.mrb[15].mxu1 }
 0x136   :  { %574 = vst [vmem:[#allocation8 + $0x68] sm:$0xff] %v386_v54  ;;  %590 = vst [vmem:[#allocation8 + $0xe8] sm:$0xff] %v450_v55 }
 0x137   :  { %809 = shalt.err (!%p806_p6)
}
 0x138   :  { %s810_s10 = scalar_lea.hbm %s886_s2, 4096 }
 0x139   :  { %p811_p7 = scmp.ne.s32.totalorder %s886_s2, %s810_s10  ;;  %p814_p8 = scmp.lt.u32.totalorder %s810_s10, %s886_s2 }
 0x13b   :  { %p816_p9 = pnand %p814_p8, %p811_p7 }
 0x13d   :  { %819 = shalt.err (!%p816_p9)
}
 0x13e   :  { %s831_s15 = smov 128   ;;  %s832_s16 = smov 8  }
 0x13f   :  { %604 = dma.vmem_to_hbm [thread:$0]  %s599_s6, 4096, %s886_s2, [#allocation5], %s831_s15, %s831_s15, %s832_s16  }
 0x140   :  { %824 = dma.done.wait [#allocation5], 4096  }
 0x141   :  { %825 = vsyncadd [#allocation5], 4294963200 }
 0x142   :  { %608 = vsyncpa [#allocation4], 1 }
 0x143   :  { %609 = vsyncpa [#allocation7], 1 }
 0x144   :  { %610 = vsyncpa [#allocation5], 1 }

</bundles_post_ra>
